<compile_context>
chip_gen: v5e
topology: v5e:2x2
jax: 0.10.0
libtpu: 0.0.40
codegen_flags: <defaults>
</compile_context>

<pallas_src>
import functools

import jax
import jax.numpy as jnp
from jax.experimental import pallas as pl
from jax.experimental.pallas import tpu as pltpu

_LANE = 128


def _round_up(x, m):
    return ((x + m - 1) // m) * m


@functools.lru_cache(maxsize=None)
def _vmem_capacity_bytes():
    """Per-core VMEM capacity; conservative 64 MiB (v7x) fallback."""
    try:
        return int(pltpu.get_tpu_info().vmem_capacity_bytes)
    except Exception:
        return 64 << 20


def _choose_nk_tiles(d_out, d_in):
    """Tile sizes along N (d_out) and K (d_in) — independent of batch M."""
    cap = _vmem_capacity_bytes()
    tn_max = 1024 if (cap >= (100 << 20) and d_out >= 1024) else 512

    # N axis (output lanes): keep blocks lane-dense multiples of 128.
    np0 = _round_up(d_out, _LANE)
    if np0 <= tn_max:
        tn, n_pad = np0, np0
    else:
        tn = tn_max
        n_pad = _round_up(d_out, tn)

    # K axis (contraction): collapse to a single tile whenever it fits.
    kp0 = _round_up(d_in, _LANE)
    if kp0 <= 2048:
        tk, k_pad = kp0, kp0
    else:
        tk = _LANE
        for cand in (2048, 1024, 512, 256, 128):
            if kp0 % cand == 0:
                tk = cand
                break
        k_pad = kp0
    return tn, n_pad, tk, k_pad


def _choose_m_tile(m):
    if m <= 512:
        return _round_up(m, 16)
    return 512  # multiple of 256 -> fills the 2x256^2 MXU on v6e/v7x


# --------------------------------------------------------------------------
# Kernels
# --------------------------------------------------------------------------
def _linear_kernel_single(x_ref, w_ref, b_ref, o_ref):
    # Single K step: one dot per output tile, bias fused, no scratch.
    o_ref[...] = (
        jnp.dot(x_ref[...], w_ref[...], preferred_element_type=jnp.float32)
        + b_ref[...].astype(jnp.float32)
    ).astype(o_ref.dtype)


def _linear_kernel_acc(x_ref, w_ref, b_ref, o_ref, acc_ref):
    # K-tiled: f32 accumulator resident across the (innermost, "arbitrary")
    # K grid axis; init at k==0, bias + writeback at k==last.
    k = pl.program_id(2)

    @pl.when(k == 0)
    def _():
        acc_ref[...] = jnp.zeros_like(acc_ref)

    acc_ref[...] += jnp.dot(x_ref[...], w_ref[...],
                            preferred_element_type=jnp.float32)

    @pl.when(k == pl.num_programs(2) - 1)
    def _():
        o_ref[...] = (acc_ref[...] + b_ref[...].astype(jnp.float32)
                      ).astype(o_ref.dtype)


# --------------------------------------------------------------------------
# pallas_call wrapper (operates on prepared, padded weight/bias)
# --------------------------------------------------------------------------
def _pallas_linear_2d(x2d, wp, b2d, *, d_out, tn, tk, k_pad):
    """x2d: (M, d_in); wp: (k_pad, n_pad) prepared weight; b2d: (1, n_pad)."""
    m, k_in = x2d.shape
    out_dtype = x2d.dtype

    # Zero-pad K (required for a correct contraction) and cast operands.
    if k_in != k_pad:
        x2d = jnp.pad(x2d, ((0, 0), (0, k_pad - k_in)))
    if x2d.dtype != wp.dtype:
        x2d = x2d.astype(wp.dtype)

    n_pad = wp.shape[1]
    tm = _choose_m_tile(m)
    grid_m = pl.cdiv(m, tm)          # ragged M handled by Pallas (no x pad)
    grid_n = n_pad // tn
    grid_k = k_pad // tk

    itemsize = jnp.dtype(wp.dtype).itemsize
    out_itemsize = jnp.dtype(out_dtype).itemsize

    footprint = (2 * (tm * tk + tk * tn + tn) * itemsize
                 + 2 * tm * tn * out_itemsize
                 + (tm * tn * 4 if grid_k > 1 else 0))
    cap = _vmem_capacity_bytes()
    vmem_limit = int(min(max(footprint * 5 // 4 + (4 << 20), 32 << 20),
                         cap * 3 // 4))

    cost = pl.CostEstimate(
        flops=2 * m * k_pad * n_pad,
        transcendentals=0,
        bytes_accessed=(grid_n * m * k_pad + grid_m * k_pad * n_pad) * itemsize
                       + m * d_out * out_itemsize)

    out_shape = jax.ShapeDtypeStruct((m, d_out), out_dtype)

    if grid_k == 1:
        grid = (grid_m, grid_n)
        in_specs = [
            pl.BlockSpec((tm, tk), lambda i, j: (i, 0)),   # x tile
            pl.BlockSpec((tk, tn), lambda i, j: (0, j)),   # weight tile
            pl.BlockSpec((1, tn), lambda i, j: (0, j)),    # bias tile
        ]
        out_specs = pl.BlockSpec((tm, tn), lambda i, j: (i, j))
        kernel = _linear_kernel_single
        scratch = []
        semantics = ("parallel", "parallel")
    else:
        grid = (grid_m, grid_n, grid_k)
        in_specs = [
            pl.BlockSpec((tm, tk), lambda i, j, k: (i, k)),
            pl.BlockSpec((tk, tn), lambda i, j, k: (k, j)),
            pl.BlockSpec((1, tn), lambda i, j, k: (0, j)),
        ]
        out_specs = pl.BlockSpec((tm, tn), lambda i, j, k: (i, j))
        kernel = _linear_kernel_acc
        scratch = [pltpu.VMEM((tm, tn), jnp.float32)]
        semantics = ("parallel", "parallel", "arbitrary")

    return pl.pallas_call(
        kernel,
        out_shape=out_shape,
        grid_spec=pltpu.PrefetchScalarGridSpec(
            num_scalar_prefetch=0,
            grid=grid,
            in_specs=in_specs,
            out_specs=out_specs,
            scratch_shapes=scratch),
        compiler_params=pltpu.CompilerParams(
            dimension_semantics=semantics,
            vmem_limit_bytes=vmem_limit),
        cost_estimate=cost,
    )(x2d, wp, b2d)


@functools.partial(jax.jit, static_argnames=("d_out", "tn", "tk", "k_pad"))
def _linear_prepared_fwd(x, wp, b2d, *, d_out, tn, tk, k_pad):
    lead = x.shape[:-1]
    x2d = x.reshape(-1, x.shape[-1])
    out = _pallas_linear_2d(x2d, wp, b2d, d_out=d_out, tn=tn, tk=tk,
                            k_pad=k_pad)
    return out.reshape(lead + (d_out,))


# --------------------------------------------------------------------------
# Parameter preparation (one-time, hoisted out of the forward path)
# --------------------------------------------------------------------------
def prepare_linear_params(weight, bias, *, compute_dtype=jnp.bfloat16):
    """One-time transpose/pad/cast of nn.Linear parameters.

    weight: (d_out, d_in) PyTorch layout; bias: (d_out,) or None.
    Returns (wp, b2d, config) where wp has shape (k_pad, n_pad) in
    compute_dtype (so the kernel runs a canonical (tm,tk)@(tk,tn) matmul
    with no per-tile transpose) and b2d has shape (1, n_pad) in float32.
    """
    d_out, d_in = weight.shape
    tn, n_pad, tk, k_pad = _choose_nk_tiles(d_out, d_in)

    wt = weight.T  # (d_in, d_out)
    if (k_pad, n_pad) != (d_in, d_out):
        wt = jnp.pad(wt, ((0, k_pad - d_in), (0, n_pad - d_out)))
    if compute_dtype is not None:
        wt = wt.astype(compute_dtype)

    if bias is None:
        b2d = jnp.zeros((1, n_pad), dtype=jnp.float32)
    else:
        bp = bias.astype(jnp.float32)
        if n_pad != d_out:
            bp = jnp.pad(bp, (0, n_pad - d_out))
        b2d = bp.reshape(1, n_pad)

    config = dict(d_out=d_out, d_in=d_in, tn=tn, tk=tk, k_pad=k_pad)
    return wt, b2d, config


class PallasLinear:
    """Hot-path API: prepares weights once, reuses them every forward."""

    def __init__(self, weight, bias, *, compute_dtype=jnp.bfloat16):
        self.wp, self.b2d, self.cfg = prepare_linear_params(
            weight, bias, compute_dtype=compute_dtype)

    def __call__(self, x):
        return _linear_prepared_fwd(
            x, self.wp, self.b2d,
            d_out=self.cfg["d_out"], tn=self.cfg["tn"],
            tk=self.cfg["tk"], k_pad=self.cfg["k_pad"])


def linear_forward(x, weight, bias=None, *, compute_dtype=jnp.bfloat16):
    """Convenience one-shot API: y = x @ weight.T + bias (nn.Linear).

    For repeated calls with the same parameters, prefer PallasLinear which
    hoists the weight transpose/pad/cast out of the forward path.
    """
    wp, b2d, cfg = prepare_linear_params(weight, bias,
                                         compute_dtype=compute_dtype)
    return _linear_prepared_fwd(x, wp, b2d,
                                d_out=cfg["d_out"], tn=cfg["tn"],
                                tk=cfg["tk"], k_pad=cfg["k_pad"])


def init_linear_params(key, d_in, d_out):
    """Mirror the PyTorch module: xavier_normal weight, default uniform bias."""
    kw, kb = jax.random.split(key)
    xavier_std = (2.0 / (d_in + d_out)) ** 0.5
    weight = xavier_std * jax.random.normal(kw, (d_out, d_in), dtype=jnp.float32)
    bound = 1.0 / (d_in ** 0.5)
    bias = jax.random.uniform(kb, (d_out,), minval=-bound, maxval=bound,
                              dtype=jnp.float32)
    return weight, bias


if __name__ == "__main__":
    key = jax.random.PRNGKey(0)
    k_x, k_p = jax.random.split(key)

    # ---- test 1: small BiDAF-like shapes, prepared (hot) path, bf16 ops ----
    batch, seq, d_in, d_out = 2, 8, 32, 64
    x = jax.random.normal(k_x, (batch, seq, d_in), dtype=jnp.float32)
    weight, bias = init_linear_params(k_p, d_in, d_out)

    layer = PallasLinear(weight, bias)           # bf16 operands, f32 acc
    y = jax.block_until_ready(layer(x))
    y_ref = x @ weight.T + bias
    assert y.shape == (batch, seq, d_out)
    assert jnp.allclose(y, y_ref, atol=5e-2, rtol=5e-2)

    # ---- test 2: ragged M / non-lane d_in,d_out (padding-free M/N path) ----
    x2 = jax.random.normal(k_x, (3, 37, 200), dtype=jnp.float32)
    w2, b2 = init_linear_params(k_p, 200, 300)
    y2 = jax.block_until_ready(linear_forward(x2, w2, b2))
    y2_ref = x2 @ w2.T + b2
    assert y2.shape == (3, 37, 300)
    assert jnp.allclose(y2, y2_ref, atol=5e-2, rtol=5e-2)

    # ---- test 3: large K exercising the K-tiled accumulator kernel (f32) ---
    x3 = jax.random.normal(k_x, (2, 5, 2304), dtype=jnp.float32)
    w3, b3 = init_linear_params(k_p, 2304, 160)
    y3 = jax.block_until_ready(linear_forward(x3, w3, b3, compute_dtype=None))
    y3_ref = x3 @ w3.T + b3
    assert y3.shape == (2, 5, 160)
    assert jnp.allclose(y3, y3_ref, atol=2e-3, rtol=2e-3)

    print("KERNEL_OK")
</pallas_src>

<mosaic_0001>
module attributes {stable_mosaic.version = 11 : i64} {
  func.func @_linear_kernel_single(%arg0: i32, %arg1: i32, %arg2: memref<16x128xbf16, #tpu.memory_space<vmem>>, %arg3: memref<128x128xbf16, #tpu.memory_space<vmem>>, %arg4: memref<1x128xf32, #tpu.memory_space<vmem>>, %arg5: memref<16x128xf32, #tpu.memory_space<vmem>>) attributes {dimension_semantics = [#tpu.dimension_semantics<parallel>, #tpu.dimension_semantics<parallel>], iteration_bounds = array<i64: 1, 1>, scalar_prefetch = 0 : i64, scratch_operands = 0 : i64, tpu.core_type = #tpu.core_type<tc>, window_params = [{transform_indices = @transform_0, window_bounds = array<i64: 16, 128>}, {transform_indices = @transform_1, window_bounds = array<i64: 128, 128>}, {transform_indices = @transform_2, window_bounds = array<i64: 1, 128>}, {transform_indices = @transform_3, window_bounds = array<i64: 16, 128>}]} {
    %c0 = arith.constant 0 : index
    %c0_0 = arith.constant 0 : index
    %0 = vector.load %arg2[%c0, %c0_0] : memref<16x128xbf16, #tpu.memory_space<vmem>>, vector<16x128xbf16>
    %c0_1 = arith.constant 0 : index
    %c0_2 = arith.constant 0 : index
    %1 = vector.load %arg3[%c0_1, %c0_2] : memref<128x128xbf16, #tpu.memory_space<vmem>>, vector<128x128xbf16>
    %cst = arith.constant dense<0.000000e+00> : vector<16x128xf32>
    %2 = tpu.matmul %0, %1, %cst {dimension_numbers = #tpu.dot_dimension_numbers<[1], [0], [0], [1], [0, 0, 1, 1], [], []>} : vector<16x128xbf16>, vector<128x128xbf16>, vector<16x128xf32> -> vector<16x128xf32>
    %c0_3 = arith.constant 0 : index
    %c0_4 = arith.constant 0 : index
    %3 = vector.load %arg4[%c0_3, %c0_4] : memref<1x128xf32, #tpu.memory_space<vmem>>, vector<1x128xf32>
    %4 = vector.broadcast %3 : vector<1x128xf32> to vector<16x128xf32>
    %5 = arith.addf %2, %4 : vector<16x128xf32>
    %c0_5 = arith.constant 0 : index
    %c0_6 = arith.constant 0 : index
    %6 = vector.load %arg5[%c0_5, %c0_6] : memref<16x128xf32, #tpu.memory_space<vmem>>, vector<16x128xf32>
    tpu.vector_store %arg5[%c0_5, %c0_6], %5 {strides = array<i32>} : memref<16x128xf32, #tpu.memory_space<vmem>>, vector<16x128xf32>,
    return
  }
  func.func @transform_0(%arg0: i32, %arg1: i32) -> (i32, i32) {
    %c0_i32 = arith.constant 0 : i32
    %c0_i32_0 = arith.constant 0 : i32
    return %arg0, %c0_i32 : i32, i32
  }
  func.func @transform_1(%arg0: i32, %arg1: i32) -> (i32, i32) {
    %c0_i32 = arith.constant 0 : i32
    %c0_i32_0 = arith.constant 0 : i32
    return %c0_i32, %arg1 : i32, i32
  }
  func.func @transform_2(%arg0: i32, %arg1: i32) -> (i32, i32) {
    %c0_i32 = arith.constant 0 : i32
    %c0_i32_0 = arith.constant 0 : i32
    return %c0_i32, %arg1 : i32, i32
  }
  func.func @transform_3(%arg0: i32, %arg1: i32) -> (i32, i32) {
    %c0_i32 = arith.constant 0 : i32
    return %arg0, %arg1 : i32, i32
  }
}

</mosaic_0001>

<bundles_post_ra>
// kernel: _linear_prepared_fwd.1
= control target key start
LH: loop header
LB: loop body
LE: loop exit
PB: predicated region body
PF: predicated region fallthrough
CT: control target
= control target key end

     0   :  { %8 = vsyncpa [#allocation3], 0  ;;  %s284_s0 = inlined_call_operand.vmem [shape: bf16[16,128], index: 0, kind: input, shape index: {}]   ;;  %s285_s1 = inlined_call_operand.hbm [shape: bf16[128,128], index: 1, kind: input, shape index: {}]   ;;  %s286_s2 = inlined_call_operand.vmem [shape: f32[1,128], index: 2, kind: input, shape index: {}]   ;;  %s287_s3 = inlined_call_operand.hbm [shape: f32[16,64], index: 3, kind: output, shape index: {}]  }
   0x1   :  { %9 = vsyncpa [#allocation4], 0  ;;  %s16_s14 = sshll.u32 %s285_s1, 4  ;;  %s246_s15 = smov [#allocation2]   ;;  %s17_s14 = int_to_ptr.hbm [resolvable:$true] %s16_s14 }
   0x2   :  { %s18_s16 = sshll.u32 %s246_s15, 4  ;;  %s247_s17 = smov 64   ;;  %s19_s16 = int_to_ptr.vmem [resolvable:$true] %s18_s16 }
   0x3   :  { %s248_s18 = smov 4  }
   0x4   :  { %24 = dma.hbm_to_vmem [thread:$0]  %s17_s14, 1024, %s19_s16, [#allocation3], %s247_s17, %s247_s17, %s248_s18  }
   0x5   :  { %242 = dma.done.wait [#allocation3], 1024  }
   0x6   :  { %243 = vsyncadd [#allocation3], 4294966272  ;;  %v186_v0 = vld [vmem:[#allocation2 + $0x38] sm:$0xff]  ;;  %v185_v1 = vld [vmem:[#allocation2 + $0x30] sm:$0xff]  ;;  %s249_s22 = smov [#allocation5]   ;;  %s129_s26 = sshll.u32 %s287_s3, 4  ;;  %s130_s26 = int_to_ptr.hbm [resolvable:$true] %s129_s26 }
   0x7   :  { %107 = vmatpush.bf16.msra.mxu0 %v186_v0  ;;  %v184_v2 = vld [vmem:[#allocation2 + $0x28] sm:$0xff]  ;;  %v183_v3 = vld [vmem:[#allocation2 + $0x20] sm:$0xff]  ;;  %v182_v4 = vld [vmem:[#allocation2 + $0x18] sm:$0xff]  ;;  %s127_s23 = sshll.u32 %s249_s22, 4  ;;  %s251_s27 = smov 8   ;;  %s128_s23 = int_to_ptr.vmem [resolvable:$true] %s127_s23 }
   0x8   :  { %v181_v5 = vld [vmem:[#allocation2 + $0x10] sm:$0xff]  ;;  %v180_v6 = vld [vmem:[#allocation2 + $0x8] sm:$0xff]  ;;  %v179_v7 = vld [vmem:[#allocation2] sm:$0xff] }
   0x9   :  { %v178_v8 = vld [vmem:[%s284_s0] sm:$0xff]  ;;  %s250_s0 = smov 128  }
   0xa   :  { %v193_v9 = vld [vmem:[%s286_s2] ss:$0 sm:$0xff] }
   0xb   :  { %108 = vmatpush.bf16.msra.mxu0 %v185_v1 }
   0xf   :  { %109 = vmatpush.bf16.msra.mxu0 %v184_v2 }
  0x13   :  { %110 = vmatpush.bf16.msra.mxu0 %v183_v3 }
  0x17   :  { %111 = vmatpush.bf16.msra.mxu0 %v182_v4 }
  0x1b   :  { %112 = vmatpush.bf16.msra.mxu0 %v181_v5 }
  0x1f   :  { %113 = vmatpush.bf16.msra.mxu0 %v180_v6 }
  0x23   :  { %114 = vmatpush.bf16.msra.mxu0 %v179_v7 }
  0x26   :  { %115 = vmatmul.bf16.vlgmr.msra.gmra.mxu0 %v178_v8 }
  0xa3   :  { %v116_v10 = vpop.f32.mrf.mxu0 }
  0xa4   :  { %v117_v11 = vadd.f32 %v193_v9, %v116_v10 }
  0xa6   :  { %121 = vst [vmem:[#allocation5] sm:$0xff] %v117_v11 }
  0xab   :  { %v118_v12 = vpop.f32.mrf.mxu0 }
  0xac   :  { %v119_v13 = vadd.f32 %v193_v9, %v118_v12 }
  0xae   :  { %122 = vst [vmem:[#allocation5 + $0x8] sm:$0xff] %v119_v13 }
  0xaf   :  { %135 = dma.vmem_to_hbm [thread:$0]  %s128_s23, 256, %s130_s26, [#allocation4], %s250_s0, %s250_s0, %s251_s27  }
  0xb0   :  { %244 = dma.done.wait [#allocation4], 256  }
  0xb1   :  { %245 = vsyncadd [#allocation4], 4294967040 }
  0xb2   :  { %140 = vsyncpa [#allocation3], 1 }
  0xb3   :  { %141 = vsyncpa [#allocation4], 1 }

</bundles_post_ra>
